<compile_context>
chip_gen: v7x
topology: tpu7x:2x2x1
jax: 0.10.0
libtpu: 0.0.40
codegen_flags: <defaults>
</compile_context>

<pallas_src>
from functools import partial

import jax
import jax.numpy as jnp
from jax.experimental import pallas as pl
from jax.experimental.pallas import tpu as pltpu

BATCH_SIZE = 4           # matches the module's hard-coded BATCH_SIZE
NO_NEURONS = 32          # hidden width ("no_neurons")
IN_FEATURES = 28 * 28    # 784
OUT_FEATURES = 10
H_PAD = 128              # hidden width padded to a full 128-lane group
OUT_PAD = 128            # output features padded to a full 128-lane group
TILE_B = 256             # rows per grid step in the batched path


def mlp_kernel(x_ref, w1_ref, b1_ref, w2_ref, b2_ref, o_ref):
    # x_ref : (tb, 784)     f32    w1_ref: (784, H_PAD)     bf16 (pre-transposed, padded)
    # b1_ref: (1, H_PAD)    f32    w2_ref: (H_PAD, OUT_PAD) bf16 (pre-transposed, padded)
    # b2_ref: (1, OUT_PAD)  f32    o_ref : (tb, OUT_PAD)    f32
    x = x_ref[...].astype(jnp.bfloat16)                      # f32 -> bf16 only at MXU input
    h = jnp.dot(x, w1_ref[...], preferred_element_type=jnp.float32)      # (tb, H_PAD) f32
    h = jnp.maximum(h + b1_ref[...], jnp.float32(0.0))       # f32 bias + ReLU on VPU
    y = jnp.dot(h.astype(jnp.bfloat16), w2_ref[...],
                preferred_element_type=jnp.float32)           # (tb, OUT_PAD) f32
    o_ref[...] = y + b2_ref[...]                              # lane-dense f32 store


def prepare_params(w1, b1, w2, b2):
    """One-time parameter prep (NOT per forward): pre-transpose to canonical (K, N)
    layout, cast weights to bf16, and zero-pad hidden 32->128 / out 10->128 so both
    matmul operands and the output are lane-dense. Padding is applied AFTER the
    transpose so padded rows/cols stay exactly zero."""
    w1t = jnp.zeros((IN_FEATURES, H_PAD), jnp.bfloat16)
    w1t = w1t.at[:, :NO_NEURONS].set(w1.T.astype(jnp.bfloat16))          # (784, 128)
    b1r = jnp.zeros((1, H_PAD), jnp.float32)
    b1r = b1r.at[0, :NO_NEURONS].set(b1.astype(jnp.float32))             # (1, 128)
    w2t = jnp.zeros((H_PAD, OUT_PAD), jnp.bfloat16)
    w2t = w2t.at[:NO_NEURONS, :OUT_FEATURES].set(w2.T.astype(jnp.bfloat16))  # (128, 128)
    b2r = jnp.zeros((1, OUT_PAD), jnp.float32)
    b2r = b2r.at[0, :OUT_FEATURES].set(b2.astype(jnp.float32))           # (1, 128)
    return w1t, b1r, w2t, b2r


def _cost(n_blocks, rows_per_block):
    per_block_flops = (2 * rows_per_block * IN_FEATURES * H_PAD
                       + 2 * rows_per_block * H_PAD * OUT_PAD)
    return pl.CostEstimate(
        flops=n_blocks * per_block_flops,
        transcendentals=0,
        bytes_accessed=(n_blocks * rows_per_block * IN_FEATURES * 4    # x (f32) per block
                        + IN_FEATURES * H_PAD * 2                      # W1T (bf16), fetched once
                        + H_PAD * 4                                    # b1
                        + H_PAD * OUT_PAD * 2                          # W2T (bf16), fetched once
                        + OUT_PAD * 4                                  # b2
                        + n_blocks * rows_per_block * OUT_PAD * 4))    # out (f32) per block


def _mlp_forward_2d(x2d, w1t, b1r, w2t, b2r, *, tile_b=TILE_B):
    n = x2d.shape[0]

    if n <= tile_b:
        # Single-block path (the module's tiny batch): no grid -- the whole problem
        # is <1 MiB resident and a grid would only add per-step pipeline overhead.
        vmem = pl.BlockSpec(memory_space=pltpu.MemorySpace.VMEM)
        out = pl.pallas_call(
            mlp_kernel,
            out_shape=jax.ShapeDtypeStruct((n, OUT_PAD), jnp.float32),
            in_specs=[vmem] * 5,
            out_specs=vmem,
            cost_estimate=_cost(1, n),
        )(x2d, w1t, b1r, w2t, b2r)
        return out[:, :OUT_FEATURES]

    # Batched path: grid over batch rows. Weight/bias BlockSpecs return the same
    # block index every step, so they are DMA'd once and stay VMEM-resident.
    n_blocks = pl.cdiv(n, tile_b)
    n_padded = n_blocks * tile_b
    if n_padded != n:
        x2d = jnp.pad(x2d, ((0, n_padded - n), (0, 0)))
    out = pl.pallas_call(
        mlp_kernel,
        out_shape=jax.ShapeDtypeStruct((n_padded, OUT_PAD), jnp.float32),
        grid=(n_blocks,),
        in_specs=[
            pl.BlockSpec((tile_b, IN_FEATURES), lambda i: (i, 0)),    # x rows per step
            pl.BlockSpec((IN_FEATURES, H_PAD), lambda i: (0, 0)),     # W1T: VMEM-resident
            pl.BlockSpec((1, H_PAD), lambda i: (0, 0)),               # b1 : VMEM-resident
            pl.BlockSpec((H_PAD, OUT_PAD), lambda i: (0, 0)),         # W2T: VMEM-resident
            pl.BlockSpec((1, OUT_PAD), lambda i: (0, 0)),             # b2 : VMEM-resident
        ],
        out_specs=pl.BlockSpec((tile_b, OUT_PAD), lambda i: (i, 0)),  # unmasked lane-dense
        compiler_params=pltpu.CompilerParams(
            dimension_semantics=("parallel",)),                       # v7x: 2 TCs split blocks
        cost_estimate=_cost(n_blocks, tile_b),
    )(x2d, w1t, b1r, w2t, b2r)
    return out[:n, :OUT_FEATURES]


@jax.jit
def sequential_mnist_forward(x_nchw, w1t, b1r, w2t, b2r):
    """Module-faithful forward: relu(linear1(x.view(BATCH_SIZE, -1))) -> linear2."""
    x2d = x_nchw.reshape(BATCH_SIZE, -1)          # f32; cast to bf16 happens in-kernel
    return _mlp_forward_2d(x2d, w1t, b1r, w2t, b2r)


@partial(jax.jit, static_argnames=("tile_b",))
def sequential_mnist_forward_batched(x_nchw, w1t, b1r, w2t, b2r, tile_b=TILE_B):
    """Throughput path: many samples per pallas_call, grid over batch rows."""
    x2d = x_nchw.reshape(x_nchw.shape[0], -1)
    return _mlp_forward_2d(x2d, w1t, b1r, w2t, b2r, tile_b=tile_b)


if __name__ == "__main__":
    key = jax.random.PRNGKey(0)
    k_x, k_xb, k_w1, k_b1, k_w2, k_b2 = jax.random.split(key, 6)

    # deterministic synthetic parameters (same shapes as the torch module)
    bound1 = 1.0 / (IN_FEATURES ** 0.5)
    bound2 = 1.0 / (NO_NEURONS ** 0.5)
    w1 = jax.random.uniform(k_w1, (NO_NEURONS, IN_FEATURES), jnp.float32, -bound1, bound1)
    b1 = jax.random.uniform(k_b1, (NO_NEURONS,), jnp.float32, -bound1, bound1)
    w2 = jax.random.uniform(k_w2, (OUT_FEATURES, NO_NEURONS), jnp.float32, -bound2, bound2)
    b2 = jax.random.uniform(k_b2, (OUT_FEATURES,), jnp.float32, -bound2, bound2)

    params = prepare_params(w1, b1, w2, b2)      # one-time, outside the forward path
    w1q = w1.astype(jnp.bfloat16).astype(jnp.float32)
    w2q = w2.astype(jnp.bfloat16).astype(jnp.float32)

    def ref_quantized(x2d):
        # same bf16 quantization points as the kernel (tight check of kernel math)
        xq = x2d.astype(jnp.bfloat16).astype(jnp.float32)
        hq = jnp.maximum(xq @ w1q.T + b1, 0.0).astype(jnp.bfloat16).astype(jnp.float32)
        return hq @ w2q.T + b2

    # ---- module-faithful tiny batch (BATCH_SIZE = 4, no grid) -------------------
    x = jax.random.normal(k_x, (BATCH_SIZE, 1, 28, 28), jnp.float32)
    y = sequential_mnist_forward(x, *params)
    y = jax.block_until_ready(y)
    assert y.shape == (BATCH_SIZE, OUT_FEATURES)

    x2d = x.reshape(BATCH_SIZE, -1)
    ref_q = ref_quantized(x2d)
    assert jnp.allclose(y, ref_q, atol=1e-3, rtol=1e-3), float(jnp.max(jnp.abs(y - ref_q)))

    # full-f32 reference (bf16 weights perturb it only slightly)
    ref_f32 = jnp.maximum(
        jnp.dot(x2d, w1.T, precision="highest") + b1, 0.0)
    ref_f32 = jnp.dot(ref_f32, w2.T, precision="highest") + b2
    assert jnp.allclose(y, ref_f32, atol=5e-2), float(jnp.max(jnp.abs(y - ref_f32)))

    # ---- batched path (grid over batch, VMEM-resident weights) ------------------
    NB = 512                                      # 2 grid steps of TILE_B = 256 rows
    xb = jax.random.normal(k_xb, (NB, 1, 28, 28), jnp.float32)
    yb = sequential_mnist_forward_batched(xb, *params)
    yb = jax.block_until_ready(yb)
    assert yb.shape == (NB, OUT_FEATURES)

    ref_qb = ref_quantized(xb.reshape(NB, -1))
    assert jnp.allclose(yb, ref_qb, atol=2e-3, rtol=2e-3), float(jnp.max(jnp.abs(yb - ref_qb)))

    print("KERNEL_OK")
</pallas_src>

<mosaic_0001>
module attributes {stable_mosaic.version = 11 : i64} {
  func.func @mlp_kernel(%arg0: memref<4x784xf32, #tpu.memory_space<vmem>>, %arg1: memref<784x128xbf16, #tpu.memory_space<vmem>>, %arg2: memref<1x128xf32, #tpu.memory_space<vmem>>, %arg3: memref<128x128xbf16, #tpu.memory_space<vmem>>, %arg4: memref<1x128xf32, #tpu.memory_space<vmem>>, %arg5: memref<4x128xf32, #tpu.memory_space<vmem>>) attributes {dimension_semantics = [], scalar_prefetch = 0 : i64, scratch_operands = 0 : i64, tpu.core_type = #tpu.core_type<tc>} {
    %c0 = arith.constant 0 : index
    %c0_0 = arith.constant 0 : index
    %0 = vector.load %arg0[%c0, %c0_0] : memref<4x784xf32, #tpu.memory_space<vmem>>, vector<4x784xf32>
    %1 = arith.truncf %0 : vector<4x784xf32> to vector<4x784xbf16>
    %c0_1 = arith.constant 0 : index
    %c0_2 = arith.constant 0 : index
    %2 = vector.load %arg1[%c0_1, %c0_2] : memref<784x128xbf16, #tpu.memory_space<vmem>>, vector<784x128xbf16>
    %cst = arith.constant dense<0.000000e+00> : vector<4x128xf32>
    %3 = tpu.matmul %1, %2, %cst {dimension_numbers = #tpu.dot_dimension_numbers<[1], [0], [0], [1], [0, 0, 1, 1], [], []>} : vector<4x784xbf16>, vector<784x128xbf16>, vector<4x128xf32> -> vector<4x128xf32>
    %c0_3 = arith.constant 0 : index
    %c0_4 = arith.constant 0 : index
    %4 = vector.load %arg2[%c0_3, %c0_4] : memref<1x128xf32, #tpu.memory_space<vmem>>, vector<1x128xf32>
    %5 = vector.broadcast %4 : vector<1x128xf32> to vector<4x128xf32>
    %6 = arith.addf %3, %5 : vector<4x128xf32>
    %cst_5 = arith.constant 0.000000e+00 : f32
    %7 = vector.broadcast %cst_5 : f32 to vector<4x128xf32>
    %8 = arith.maximumf %6, %7 : vector<4x128xf32>
    %9 = arith.truncf %8 : vector<4x128xf32> to vector<4x128xbf16>
    %c0_6 = arith.constant 0 : index
    %c0_7 = arith.constant 0 : index
    %10 = vector.load %arg3[%c0_6, %c0_7] : memref<128x128xbf16, #tpu.memory_space<vmem>>, vector<128x128xbf16>
    %cst_8 = arith.constant dense<0.000000e+00> : vector<4x128xf32>
    %11 = tpu.matmul %9, %10, %cst_8 {dimension_numbers = #tpu.dot_dimension_numbers<[1], [0], [0], [1], [0, 0, 1, 1], [], []>} : vector<4x128xbf16>, vector<128x128xbf16>, vector<4x128xf32> -> vector<4x128xf32>
    %c0_9 = arith.constant 0 : index
    %c0_10 = arith.constant 0 : index
    %12 = vector.load %arg4[%c0_9, %c0_10] : memref<1x128xf32, #tpu.memory_space<vmem>>, vector<1x128xf32>
    %13 = vector.broadcast %12 : vector<1x128xf32> to vector<4x128xf32>
    %14 = arith.addf %11, %13 : vector<4x128xf32>
    %c0_11 = arith.constant 0 : index
    %c0_12 = arith.constant 0 : index
    %15 = vector.load %arg5[%c0_11, %c0_12] : memref<4x128xf32, #tpu.memory_space<vmem>>, vector<4x128xf32>
    tpu.vector_store %arg5[%c0_11, %c0_12], %14 {strides = array<i32>} : memref<4x128xf32, #tpu.memory_space<vmem>>, vector<4x128xf32>,
    return
  }
}

</mosaic_0001>

<bundles_post_ra>
// kernel: sequential_mnist_forward.1
= control target key start
LH: loop header
LB: loop body
LE: loop exit
PB: predicated region body
PF: predicated region fallthrough
CT: control target
= control target key end

     0   :  { %10 = vsyncpa [#allocation3], 0  ;;  %s1263_s0 = inlined_call_operand.vmem [shape: f32[4,784], index: 0, kind: input, shape index: {}]   ;;  %s1264_s1 = inlined_call_operand.vmem [shape: bf16[784,128], index: 1, kind: input, shape index: {}]   ;;  %s1265_s2 = inlined_call_operand.vmem [shape: f32[1,128], index: 2, kind: input, shape index: {}]   ;;  %s1266_s3 = inlined_call_operand.hbm [shape: bf16[128,128], index: 3, kind: input, shape index: {}]   ;;  %s1267_s4 = inlined_call_operand.vmem [shape: f32[1,128], index: 4, kind: input, shape index: {}]   ;;  %s1268_s5 = inlined_call_operand.hbm [shape: f32[4,128], index: 5, kind: output, shape index: {}]  }
   0x1   :  { %11 = vsyncpa [#allocation4], 0  ;;  %s1025_s18 = smov [#allocation2]   ;;  %s977_s22 = scalar_lea.hbm %s1266_s3, 1024 }
   0x2   :  { %s23_s19 = sshll.u32 %s1025_s18, 4  ;;  %p978_p0 = scmp.ne.s32.totalorder %s1266_s3, %s977_s22  ;;  %s24_s19 = int_to_ptr.vmem [resolvable:$true] %s23_s19 }
   0x3   :  { %p981_p1 = scmp.lt.u32.totalorder %s977_s22, %s1266_s3 }
   0x5   :  { %p983_p2 = pnand %p981_p1, %p978_p0 }
   0x7   :  { %986 = shalt.err (!%p983_p2)
}
   0x8   :  { %s987_s27 = scalar_lea.vmem %s24_s19, 1024  ;;  %p992_p4 = scmp.lt.s32.totalorder %s24_s19, %s24_s19 }
   0x9   :  { %p988_p3 = scmp.ne.s32.totalorder %s24_s19, %s987_s27  ;;  %p993_p5 = scmp.lt.s32.totalorder %s987_s27, %s987_s27 }
   0xb   :  { %p994_p6 = por %p993_p5, %p992_p4 }
   0xd   :  { %p995_p7 = pnand %p994_p6, %p988_p3 }
   0xf   :  { %998 = shalt.err (!%p995_p7)
}
  0x10   :  { %s1026_s28 = smov 64   ;;  %s1027_s29 = smov 4  }
  0x11   :  { %29 = dma.hbm_to_vmem [thread:$0]  %s1266_s3, 1024, %s24_s19, [#allocation3], %s1026_s28, %s1026_s28, %s1027_s29  }
  0x12   :  { %1021 = dma.done.wait [#allocation3], 1024  }
  0x13   :  { %1022 = vsyncadd [#allocation3], 4294966272  ;;  %v917_v0 = vld [vmem:[%s1264_s1 + $0x40] sm:$0xff]   ;;  %v921_v4 = vld [vmem:[%s1264_s1 + $0x48] sm:$0xff]   ;;  %v1028_v42 = vmov 0.0   ;;  %vm1029_vm0 = vmmov 0  }
  0x14   :  { %v918_v1 = vld [vmem:[%s1264_s1] sm:$0xff]   ;;  %808 = vmatprep.subr.bf16.mxu0 %v917_v0  ;;  %v922_v5 = vld [vmem:[%s1264_s1 + $0x8] sm:$0xff]   ;;  %v925_v8 = vld [vmem:[%s1264_s1 + $0x50] sm:$0xff]   ;;  %vm455_vm1 = vcmask 130048   ;;  %s1030_s10 = smov [#allocation5]  }
  0x15   :  { %v919_v2 = vld [vmem:[%s1264_s1 + $0xc0] sm:$0xff]   ;;  %809 = vmatpush3.bf16.msra.mxu0 %v918_v1  ;;  %v923_v6 = vld [vmem:[%s1264_s1 + $0xc8] sm:$0xff]   ;;  %v926_v9 = vld [vmem:[%s1264_s1 + $0x10] sm:$0xff]   ;;  %s739_s11 = sshll.u32 %s1030_s10, 4  ;;  %s740_s11 = int_to_ptr.vmem [resolvable:$true] %s739_s11 }
  0x16   :  { %v920_v3 = vld [vmem:[%s1264_s1 + $0x80] sm:$0xff]   ;;  %830 = vmatprep.subr.bf16.mxu1 %v919_v2  ;;  %810 = vmatprep.subr.bf16.mxu0 %v921_v4  ;;  %v924_v7 = vld [vmem:[%s1264_s1 + $0x88] sm:$0xff]   ;;  %v927_v10 = vld [vmem:[%s1264_s1 + $0xd0] sm:$0xff]   ;;  %s999_s12 = scalar_lea.vmem %s740_s11, 64  ;;  %p1004_p9 = scmp.lt.s32.totalorder %s740_s11, %s740_s11 }
  0x17   :  { %831 = vmatpush3.bf16.msra.mxu1 %v920_v3  ;;  %v928_v11 = vld [vmem:[%s1264_s1 + $0x90] sm:$0xff]   ;;  %v929_v12 = vld [vmem:[%s1264_s1 + $0x58] sm:$0xff]   ;;  %v933_v16 = vld [vmem:[%s1264_s1 + $0x60] sm:$0xff]   ;;  %p1000_p8 = scmp.ne.s32.totalorder %s740_s11, %s999_s12  ;;  %p1005_p10 = scmp.lt.s32.totalorder %s999_s12, %s999_s12 }
  0x18   :  { %832 = vmatprep.subr.bf16.mxu1 %v923_v6  ;;  %v930_v13 = vld [vmem:[%s1264_s1 + $0x18] sm:$0xff]   ;;  %v934_v17 = vld [vmem:[%s1264_s1 + $0x20] sm:$0xff]   ;;  %v937_v20 = vld [vmem:[%s1264_s1 + $0x68] sm:$0xff]  }
  0x19   :  { %811 = vmatpush3.bf16.msra.mxu0 %v922_v5  ;;  %v931_v14 = vld [vmem:[%s1264_s1 + $0xd8] sm:$0xff]   ;;  %v935_v18 = vld [vmem:[%s1264_s1 + $0xe0] sm:$0xff]   ;;  %v938_v21 = vld [vmem:[%s1264_s1 + $0x28] sm:$0xff]   ;;  %p1006_p11 = por %p1005_p10, %p1004_p9 }
  0x1a   :  { %812 = vmatprep.subr.bf16.mxu0 %v925_v8  ;;  %v932_v15 = vld [vmem:[%s1264_s1 + $0x98] sm:$0xff]   ;;  %v936_v19 = vld [vmem:[%s1264_s1 + $0xa0] sm:$0xff]   ;;  %v939_v22 = vld [vmem:[%s1264_s1 + $0xe8] sm:$0xff]  }
  0x1b   :  { %833 = vmatpush3.bf16.msra.mxu1 %v924_v7  ;;  %v940_v23 = vld [vmem:[%s1264_s1 + $0xa8] sm:$0xff]   ;;  %v941_v24 = vld [vmem:[%s1264_s1 + $0x70] sm:$0xff]   ;;  %v945_v28 = vld [vmem:[%s1264_s1 + $0x78] sm:$0xff]   ;;  %p1007_p12 = pnand %p1006_p11, %p1000_p8 }
  0x1c   :  { %834 = vmatprep.subr.bf16.mxu1 %v927_v10  ;;  %v942_v25 = vld [vmem:[%s1264_s1 + $0x30] sm:$0xff]   ;;  %v946_v29 = vld [vmem:[%s1264_s1 + $0x38] sm:$0xff]   ;;  %v36_v31 = vld [vmem:[%s1263_s0] sm:$0xff] }
  0x1d   :  { %813 = vmatpush3.bf16.msra.mxu0 %v926_v9  ;;  %v943_v26 = vld [vmem:[%s1264_s1 + $0xf0] sm:$0xff]   ;;  %v947_v30 = vld [vmem:[%s1264_s1 + $0xf8] sm:$0xff]   ;;  %v43_v32 = vcombine.high %v36_v31, %v36_v31  ;;  %v49_v34 = vpack.c.bf16 %v36_v31, %v36_v31  ;;  %v950_v35 = vld [vmem:[%s1264_s1 + $0x140] sm:$0xff]  }
  0x1e   :  { %814 = vmatprep.subr.bf16.mxu0 %v929_v12  ;;  %v944_v27 = vld [vmem:[%s1264_s1 + $0xb0] sm:$0xff]   ;;  %v949_v33 = vld [vmem:[%s1264_s1 + $0xb8] sm:$0xff]   ;;  %v37_v36 = vld [vmem:[%s1263_s0 + $0x8] sm:$0xff] }
  0x1f   :  { %835 = vmatpush3.bf16.msra.mxu1 %v928_v11  ;;  %v50_v37 = vpack.c.bf16 %v43_v32, %v43_v32  ;;  %v44_v38 = vcombine.high %v37_v36, %v37_v36  ;;  %v952_v39 = vld [vmem:[%s1264_s1 + $0x100] sm:$0xff]   ;;  %v51_v40 = vpack.c.bf16 %v37_v36, %v37_v36  ;;  %v953_v41 = vld [vmem:[%s1264_s1 + $0x148] sm:$0xff]   ;;  %v955_v45 = vld [vmem:[%s1264_s1 + $0x150] sm:$0xff]  }
  0x20   :  { %836 = vmatprep.subr.bf16.mxu1 %v931_v14  ;;  %v954_v44 = vld [vmem:[%s1264_s1 + $0x108] sm:$0xff]   ;;  %v956_v46 = vld [vmem:[%s1264_s1 + $0x110] sm:$0xff]   ;;  %v957_v47 = vld [vmem:[%s1264_s1 + $0x158] sm:$0xff]  }
  0x21   :  { %815 = vmatpush3.bf16.msra.mxu0 %v930_v13  ;;  %491 = vmatprep.mubr.bf16.mxu0 %v50_v37  ;;  %v52_v43 = vpack.c.bf16 %v44_v38, %v44_v38  ;;  %v958_v48 = vld [vmem:[%s1264_s1 + $0x118] sm:$0xff]   ;;  %v959_v49 = vld [vmem:[%s1264_s1 + $0x160] sm:$0xff]   ;;  %v961_v51 = vld [vmem:[%s1264_s1 + $0x168] sm:$0xff]  }
  0x22   :  { %816 = vmatprep.subr.bf16.mxu0 %v933_v16  ;;  %v960_v50 = vld [vmem:[%s1264_s1 + $0x120] sm:$0xff]   ;;  %v38_v53 = vld [vmem:[%s1263_s0 + $0x10] sm:$0xff]  ;;  %v39_v55 = vld [vmem:[%s1263_s0 + $0x18] sm:$0xf] }
  0x23   :  { %837 = vmatpush3.bf16.msra.mxu1 %v932_v15  ;;  %531 = vmatprep.mubr.bf16.mxu1 %v52_v43  ;;  %v967_v52 = vld [vmem:[%s1264_s1 + $0x180] sm:$0xff]   ;;  %v45_v54 = vcombine.high %v38_v53, %v38_v53  ;;  %v55_v56 = vpack.c.bf16 %v39_v55, %v39_v55  ;;  %v962_v57 = vld [vmem:[%s1264_s1 + $0x128] sm:$0xff]   ;;  %v963_v59 = vld [vmem:[%s1264_s1 + $0x170] sm:$0xff]   ;;  %v53_v63 = vpack.c.bf16 %v38_v53, %v38_v53 }
  0x24   :  { %838 = vmatprep.subr.bf16.mxu1 %v935_v18  ;;  %v964_v60 = vld [vmem:[%s1264_s1 + $0x130] sm:$0xff]   ;;  %v965_v61 = vld [vmem:[%s1264_s1 + $0x178] sm:$0xff]   ;;  %v969_v0 = vld [vmem:[#allocation2] sm:$0xff]  }
  0x25   :  { %817 = vmatpush3.bf16.msra.mxu0 %v934_v17  ;;  %v54_v58 = vpack.c.bf16 %v45_v54, %v45_v54  ;;  %v966_v62 = vld [vmem:[%s1264_s1 + $0x138] sm:$0xff]   ;;  %v970_v1 = vld [vmem:[#allocation2 + $0x8] sm:$0xff]   ;;  %v972_v3 = vld [vmem:[#allocation2 + $0x18] sm:$0xff]  }
  0x26   :  { %818 = vmatprep.subr.bf16.mxu0 %v937_v20  ;;  %v971_v2 = vld [vmem:[#allocation2 + $0x10] sm:$0xff]   ;;  %v973_v4 = vld [vmem:[#allocation2 + $0x20] sm:$0xff]   ;;  %v974_v5 = vld [vmem:[#allocation2 + $0x28] sm:$0xff]  }
  0x27   :  { %839 = vmatpush3.bf16.msra.mxu1 %v936_v19  ;;  %v975_v6 = vld [vmem:[#allocation2 + $0x30] sm:$0xff]   ;;  %v976_v7 = vld [vmem:[#allocation2 + $0x38] sm:$0xff]  }
  0x28   :  { %840 = vmatprep.subr.bf16.mxu1 %v939_v22  ;;  %v748_v9 = vld [vmem:[%s1265_s2] ss:$0 sm:$0xff] }
  0x29   :  { %819 = vmatpush3.bf16.msra.mxu0 %v938_v21 }
  0x2a   :  { %820 = vmatprep.subr.bf16.mxu0 %v941_v24 }
  0x2b   :  { %841 = vmatpush3.bf16.msra.mxu1 %v940_v23 }
  0x2c   :  { %842 = vmatprep.subr.bf16.mxu1 %v943_v26 }
  0x2d   :  { %821 = vmatpush3.bf16.msra.mxu0 %v942_v25 }
  0x2e   :  { %822 = vmatprep.subr.bf16.mxu0 %v945_v28 }
  0x2f   :  { %843 = vmatpush3.bf16.msra.mxu1 %v944_v27 }
  0x30   :  { %844 = vmatprep.subr.bf16.mxu1 %v947_v30 }
  0x31   :  { %823 = vmatpush3.bf16.msra.mxu0 %v946_v29 }
  0x32   :  { %852 = vmatprep.subr.bf16.mxu0 %v950_v35 }
  0x33   :  { %845 = vmatpush3.bf16.msra.mxu1 %v949_v33 }
  0x34   :  { %885 = vmatprep.subr.bf16.mxu1 %v1028_v42  ;;  %492 = vmatmul.mubr.bf16.vlgmr.msra.gmra.mrb[0].mxu0 %v49_v34  ;;  %v799_v34 = vld [vmem:[%s1267_s4] ss:$0 sm:$0xff] }
  0x35   :  { %853 = vmatpush3.bf16.msra.mxu0 %v952_v39  ;;  %571 = vmatprep.mubr.bf16.mxu0 %v54_v58 }
  0x36   :  { %532 = vmatmul.mubr.bf16.vlgmr.msra.gmra.mrb[0].mxu1 %v51_v40  ;;  %854 = vmatprep.subr.bf16.mxu0 %v953_v41 }
  0x37   :  { %887 = vmatprep.mubr.msk.bf16.mxu1 %vm1029_vm0, %v1028_v42  ;;  %886 = vmatpush3.bf16.msra.mxu1 %v967_v52 }
  0x38   :  { %891 = vmatprep.subr.bf16.mxu1 %v1028_v42 }
  0x39   :  { %855 = vmatpush3.bf16.msra.mxu0 %v954_v44 }
  0x3a   :  { %856 = vmatprep.subr.bf16.mxu0 %v955_v45 }
  0x3d   :  { %857 = vmatpush3.bf16.msra.mxu0 %v956_v46 }
  0x3e   :  { %858 = vmatprep.subr.bf16.mxu0 %v957_v47  ;;  %888 = vmatmul.mubr.msk.bf16.vlgmr.msra.gmra.mrb[4].mxu1 %vm455_vm1, %v55_v56 }
  0x3f   :  { %907 = vmatprep.mubr.msk.bf16.mxu1 %vm1029_vm0, %v1028_v42  ;;  %892 = vmatpush3.bf16.msra.mxu1 %v969_v0 }
  0x40   :  { %893 = vmatprep.subr.bf16.mxu1 %v1028_v42 }
  0x41   :  { %859 = vmatpush3.bf16.msra.mxu0 %v958_v48 }
  0x42   :  { %860 = vmatprep.subr.bf16.mxu0 %v959_v49 }
  0x43   :  { %894 = vmatpush3.bf16.msra.mxu1 %v970_v1 }
  0x44   :  { %895 = vmatprep.subr.bf16.mxu1 %v1028_v42 }
  0x45   :  { %861 = vmatpush3.bf16.msra.mxu0 %v960_v50 }
  0x46   :  { %862 = vmatprep.subr.bf16.mxu0 %v961_v51 }
  0x47   :  { %896 = vmatpush3.bf16.msra.mxu1 %v971_v2 }
  0x48   :  { %897 = vmatprep.subr.bf16.mxu1 %v1028_v42 }
  0x49   :  { %863 = vmatpush3.bf16.msra.mxu0 %v962_v57 }
  0x4a   :  { %864 = vmatprep.subr.bf16.mxu0 %v963_v59 }
  0x4b   :  { %898 = vmatpush3.bf16.msra.mxu1 %v972_v3 }
  0x4c   :  { %899 = vmatprep.subr.bf16.mxu1 %v1028_v42 }
  0x4d   :  { %865 = vmatpush3.bf16.msra.mxu0 %v964_v60 }
  0x4e   :  { %866 = vmatprep.subr.bf16.mxu0 %v965_v61 }
  0x4f   :  { %900 = vmatpush3.bf16.msra.mxu1 %v973_v4 }
  0x50   :  { %901 = vmatprep.subr.bf16.mxu1 %v1028_v42 }
  0x51   :  { %867 = vmatpush3.bf16.msra.mxu0 %v966_v62 }
  0x53   :  { %902 = vmatpush3.bf16.msra.mxu1 %v974_v5 }
  0x54   :  { %572 = vmatmul.mubr.bf16.vlgmr.msra.gmra.mrb[4].mxu0 %v53_v63  ;;  %903 = vmatprep.subr.bf16.mxu1 %v1028_v42 }
  0x57   :  { %904 = vmatpush3.bf16.msra.mxu1 %v975_v6 }
  0x58   :  { %905 = vmatprep.subr.bf16.mxu1 %v1028_v42 }
  0x5b   :  { %906 = vmatpush3.bf16.msra.mxu1 %v976_v7 }
 0x107   :  { %v824_v8 = vpop.f32.mrb[0].mxu0 }
 0x108   :  { %v825_v10 = vpop.f32.mrb[1].mxu0 }
 0x109   :  { %v826_v11 = vadd.f32 %v825_v10, %v824_v8  ;;  %v827_v12 = vpop.f32.mrb[2].mxu0  ;;  %v846_v13 = vpop.f32.mrb[0].mxu1 }
 0x10a   :  { %v828_v14 = vpop.f32.mrb[3].mxu0  ;;  %v847_v15 = vpop.f32.mrb[1].mxu1 }
 0x10b   :  { %v494_v16 = vadd.f32 %v826_v11, %v748_v9  ;;  %v848_v17 = vadd.f32 %v847_v15, %v846_v13  ;;  %v849_v18 = vpop.f32.mrb[2].mxu1 }
 0x10c   :  { %v850_v19 = vpop.f32.mrb[3].mxu1 }
 0x10d   :  { %v534_v20 = vadd.f32 %v848_v17, %v494_v16 }
 0x111   :  { %v613_v21 = vpop.f32.mrb[4].mxu1 }
 0x112   :  { %v889_v22 = vpop.f32.mrb[5].mxu1 }
 0x113   :  { %v616_v23 = vpop.f32.mrb[6].mxu1 }
 0x114   :  { %v890_v24 = vpop.f32.mrb[7].mxu1 }
 0x127   :  { %v868_v25 = vpop.f32.mrb[4].mxu0 }
 0x128   :  { %v869_v26 = vpop.f32.mrb[5].mxu0 }
 0x129   :  { %v870_v27 = vadd.f32 %v869_v26, %v868_v25  ;;  %v871_v28 = vpop.f32.mrb[6].mxu0 }
 0x12a   :  { %v872_v29 = vpop.f32.mrb[7].mxu0 }
 0x12b   :  { %v574_v30 = vadd.f32 %v870_v27, %v534_v20 }
 0x12d   :  { %v614_v31 = vadd.f32 %v613_v21, %v574_v30 }
 0x12f   :  { %v619_v32 = vmax.f32 %v614_v31, 0.0 }
 0x131   :  { %v620_v33 = vpack.c.bf16 %v619_v32, %v619_v32 }
 0x133   :  { %908 = vmatmul.mubr.bf16.vlgmr.msra.gmra.mrb[8].mxu1 %v620_v33 }
 0x206   :  { %v726_v35 = vpop.f32.mrb[8].mxu1 }
 0x207   :  { %v727_v36 = vadd.f32 %v799_v34, %v726_v35  ;;  %v909_v37 = vpop.f32.mrb[9].mxu1 }
 0x208   :  { %v729_v38 = vpop.f32.mrb[10].mxu1 }
 0x209   :  { %732 = vst [vmem:[#allocation5] sm:$0xf] %v727_v36  ;;  %v910_v39 = vpop.f32.mrb[11].mxu1 }
 0x20a   :  { %1010 = shalt.err (!%p1007_p12)
}
 0x20b   :  { %s1011_s4 = scalar_lea.hbm %s1268_s5, 64 }
 0x20c   :  { %p1012_p13 = scmp.ne.s32.totalorder %s1268_s5, %s1011_s4  ;;  %p1015_p0 = scmp.lt.u32.totalorder %s1011_s4, %s1268_s5 }
 0x20e   :  { %p1017_p1 = pnand %p1015_p0, %p1012_p13 }
 0x210   :  { %1020 = shalt.err (!%p1017_p1)
}
 0x211   :  { %742 = dma.vmem_to_hbm [thread:$0]  %s740_s11, 64, %s1268_s5, [#allocation4]  }
 0x212   :  { %1023 = dma.done.wait [#allocation4], 64  }
 0x213   :  { %1024 = vsyncadd [#allocation4], 4294967232 }
 0x214   :  { %746 = vsyncpa [#allocation3], 1 }
 0x215   :  { %747 = vsyncpa [#allocation4], 1 }

</bundles_post_ra>
